<compile_context>
chip_gen: v6e
topology: v6e:2x2x1
jax: 0.10.0
libtpu: 0.0.40
codegen_flags: <defaults>
</compile_context>

<pallas_src>
import jax
import jax.numpy as jnp
from jax.experimental import pallas as pl
from jax.experimental.pallas import tpu as pltpu

# physics constants standing in for the external `param` module
DT = 0.01                 # param.dt
KB = 8.617333262e-5       # param.kB (Boltzmann, eV/K)
# param.dx / param.dy (and LaplacianOp) are unused in forward()

N_CON = 24
N_ETA = 2
N_FEAT = N_CON + 2 * N_ETA  # 28 feature channels
N_OUT = 3                   # delta_con, delta_eta1, delta_eta2


def _sinter_kernel(w_ref, feat_ref, con_ref, eta1_ref, eta2_ref):
    # w_ref: (3, 28) fused weights; feat_ref: (28, TILE);
    # con/eta1/eta2 refs: (1, TILE) each.  One MXU op per grid step, the
    # three-way split happens on the (cheap) sublane-sliced writeback.
    res = jnp.dot(w_ref[...], feat_ref[...],
                  preferred_element_type=jnp.float32,
                  precision=jax.lax.Precision.HIGHEST)
    con_ref[...] = res[0:1, :]
    eta1_ref[...] = res[1:2, :]
    eta2_ref[...] = res[2:3, :]


def _build_weight_matrix(p):
    """Scalar parameter math (glue, plain JAX): fold abs(), polynomial, dt and
    vm/kB scaling into ONE (3, 28) coefficient matrix for the fused matmul."""
    Qvol = jnp.abs(p["Qvol"])[0]
    Qsur = jnp.abs(p["Qsur"])[0]
    Qgrb = jnp.abs(p["Qgrb"])[0]
    dvol0 = jnp.abs(p["dvol0"])[0]
    dsur0 = jnp.abs(p["dsur0"])[0]
    dgrb0 = jnp.abs(p["dgrb0"])[0]
    coefl = jnp.abs(p["coefl"])[0]
    coefk = jnp.abs(p["coefk"])[0]
    coefm = jnp.abs(p["coefm"])[0]
    vm = jnp.abs(p["vm"])[0]

    def block(d0, Q):
        return [d0, d0 * Q, d0 * Q**2, d0 * Q**3,
                -coefm * d0, -coefm * d0 * Q,
                -coefm * d0 * Q**2, -coefm * d0 * Q**3]

    w_con = jnp.stack(block(dvol0, Qvol) + block(dsur0, Qsur) + block(dgrb0, Qgrb))
    w_con = w_con * (DT * vm / KB)                  # fold dt * vm/kB scale
    w_eta = jnp.stack([coefl, coefl * coefk]) * DT  # fold dt scale

    w = jnp.zeros((N_OUT, N_FEAT), jnp.float32)
    w = w.at[0, :N_CON].set(w_con.astype(jnp.float32))
    w = w.at[1, N_CON:N_CON + N_ETA].set(w_eta.astype(jnp.float32))
    w = w.at[2, N_CON + N_ETA:N_FEAT].set(w_eta.astype(jnp.float32))
    return w


def sinter_single_timestep(features, params, *, tile=32768):
    B, C, H, W = features.shape
    assert C == N_FEAT, f"expected {N_FEAT} feature channels, got {C}"
    S = H * W

    # free reshape (collapses trailing contiguous dims); keep NATIVE dtype
    # (no f32 upcast pass over HBM for bf16 inputs)
    feat = features.reshape(B, C, S)
    w = _build_weight_matrix(params).astype(feat.dtype)

    # lane tile: multiple of 128, capped at the (lane-rounded) spatial extent
    tile = min(int(tile), pl.cdiv(S, 128) * 128)
    if B == 1 and S > 128:
        # v7x megacore guard: keep >= 2 spatial grid steps so both TCs work
        tile = min(tile, pl.cdiv(pl.cdiv(S, 2), 128) * 128)
    assert tile % 128 == 0, "tile must be a multiple of 128"

    grid = (B, pl.cdiv(S, tile))
    feat_bytes = jnp.dtype(feat.dtype).itemsize
    cost = pl.CostEstimate(
        flops=2 * N_OUT * N_FEAT * B * S,
        transcendentals=0,
        bytes_accessed=N_FEAT * B * S * feat_bytes + N_OUT * B * S * 4
        + N_OUT * N_FEAT * feat_bytes,
    )

    out_sds = jax.ShapeDtypeStruct((B, 1, S), jnp.float32)
    out_spec = pl.BlockSpec((None, 1, tile), lambda b, t: (b, 0, t))

    out_con, out_eta1, out_eta2 = pl.pallas_call(
        _sinter_kernel,
        out_shape=(out_sds, out_sds, out_sds),
        grid_spec=pltpu.PrefetchScalarGridSpec(
            num_scalar_prefetch=0,
            grid=grid,
            in_specs=[
                # fused (3, 28) weight matrix, resident for every grid step
                pl.BlockSpec((N_OUT, N_FEAT), lambda b, t: (0, 0)),
                # native-layout feature slab: batch squeezed, channels on
                # sublanes, spatial lane-dense; ragged tail masked by Pallas
                pl.BlockSpec((None, N_FEAT, tile), lambda b, t: (b, 0, t)),
            ],
            out_specs=(out_spec, out_spec, out_spec),
        ),
        compiler_params=pltpu.CompilerParams(
            dimension_semantics=("parallel", "parallel"),
            vmem_limit_bytes=32 << 20),
        cost_estimate=cost,
    )(w, feat)

    # (B, 1, S) -> (B, H, W): pure metadata reshape, no data movement
    delta_con = out_con.reshape(B, H, W)
    delta_eta1 = out_eta1.reshape(B, H, W)
    delta_eta2 = out_eta2.reshape(B, H, W)
    return delta_con, delta_eta1, delta_eta2


def _reference(features, p):
    """Plain-JAX mirror of the PyTorch forward (sum then scale)."""
    Qvol = jnp.abs(p["Qvol"])[0]; Qsur = jnp.abs(p["Qsur"])[0]
    Qgrb = jnp.abs(p["Qgrb"])[0]
    dvol0 = jnp.abs(p["dvol0"])[0]; dsur0 = jnp.abs(p["dsur0"])[0]
    dgrb0 = jnp.abs(p["dgrb0"])[0]
    coefl = jnp.abs(p["coefl"])[0]; coefk = jnp.abs(p["coefk"])[0]
    coefm = jnp.abs(p["coefm"])[0]
    vm = jnp.abs(p["vm"])[0]

    def block(d0, Q):
        return [d0, d0 * Q, d0 * Q**2, d0 * Q**3,
                -coefm * d0, -coefm * d0 * Q,
                -coefm * d0 * Q**2, -coefm * d0 * Q**3]

    pl_con = block(dvol0, Qvol) + block(dsur0, Qsur) + block(dgrb0, Qgrb)
    pl_eta = [coefl, coefl * coefk]

    delta_con = jnp.zeros_like(features[:, 0], dtype=jnp.float32)
    delta_eta1 = jnp.zeros_like(features[:, 0], dtype=jnp.float32)
    delta_eta2 = jnp.zeros_like(features[:, 0], dtype=jnp.float32)
    for i in range(len(pl_con)):
        delta_con = delta_con + pl_con[i] * features[:, i]
    for i in range(len(pl_eta)):
        delta_eta1 = delta_eta1 + pl_eta[i] * features[:, i + len(pl_con)]
    for i in range(len(pl_eta)):
        delta_eta2 = delta_eta2 + pl_eta[i] * features[:, i + len(pl_con) + len(pl_eta)]
    delta_con = DT * delta_con * (vm / KB)
    delta_eta1 = DT * delta_eta1
    delta_eta2 = DT * delta_eta2
    return delta_con, delta_eta1, delta_eta2


if __name__ == "__main__":
    key = jax.random.PRNGKey(0)
    ks = jax.random.split(key, 12)

    # deterministic synthetic parameters (shapes from __init__: each (1,))
    params = {
        "coefm": jax.random.normal(ks[0], (1,)) + 0.1,
        "coefk": jax.random.normal(ks[1], (1,)) + 0.1,
        "coefl": jax.random.normal(ks[2], (1,)) + 0.1,
        "dvol0": jax.random.normal(ks[3], (1,)) + 0.1,
        "dsur0": jax.random.normal(ks[4], (1,)) + 0.1,
        "dgrb0": jax.random.normal(ks[5], (1,)) + 0.1,
        "dvap0": jnp.zeros((1,)),  # unused in forward
        "Qvol": jax.random.normal(ks[6], (1,)) + 0.1,
        "Qgrb": jax.random.normal(ks[7], (1,)) + 0.1,
        "Qsur": jax.random.normal(ks[8], (1,)) + 0.1,
        "vm": jax.random.normal(ks[9], (1,)) * 50 + 0.1,
    }

    B, H, W = 2, 16, 16
    features = jax.random.normal(ks[10], (B, N_FEAT, H, W), dtype=jnp.float32)

    out = sinter_single_timestep(features, params)
    out = jax.block_until_ready(out)

    ref = _reference(features, params)
    for o, r in zip(out, ref):
        assert o.shape == r.shape
        assert jnp.allclose(o, r, rtol=1e-4, atol=1e-4), "mismatch vs reference"

    print("KERNEL_OK")
</pallas_src>

<mosaic_0001>
module attributes {stable_mosaic.version = 11 : i64} {
  func.func @_sinter_kernel(%arg0: i32, %arg1: i32, %arg2: memref<3x28xf32, #tpu.memory_space<vmem>>, %arg3: memref<1x28x256xf32, #tpu.memory_space<vmem>>, %arg4: memref<1x1x256xf32, #tpu.memory_space<vmem>>, %arg5: memref<1x1x256xf32, #tpu.memory_space<vmem>>, %arg6: memref<1x1x256xf32, #tpu.memory_space<vmem>>) attributes {dimension_semantics = [#tpu.dimension_semantics<parallel>, #tpu.dimension_semantics<parallel>], iteration_bounds = array<i64: 2, 1>, scalar_prefetch = 0 : i64, scratch_operands = 0 : i64, tpu.core_type = #tpu.core_type<tc>, window_params = [{pipeline_mode = #tpu.pipeline_mode<synchronous>, transform_indices = @transform_0, window_bounds = array<i64: 3, 28>}, {transform_indices = @transform_1, window_bounds = array<i64: 1, 28, 256>}, {transform_indices = @transform_2, window_bounds = array<i64: 1, 1, 256>}, {transform_indices = @transform_3, window_bounds = array<i64: 1, 1, 256>}, {transform_indices = @transform_4, window_bounds = array<i64: 1, 1, 256>}]} {
    %c0 = arith.constant 0 : index
    %c0_0 = arith.constant 0 : index
    %0 = vector.load %arg2[%c0, %c0_0] : memref<3x28xf32, #tpu.memory_space<vmem>>, vector<3x28xf32>
    %c0_1 = arith.constant 0 : index
    %c0_2 = arith.constant 0 : index
    %c0_3 = arith.constant 0 : index
    %1 = vector.load %arg3[%c0_1, %c0_2, %c0_3] : memref<1x28x256xf32, #tpu.memory_space<vmem>>, vector<1x28x256xf32>
    %2 = vector.shape_cast %1 : vector<1x28x256xf32> to vector<28x256xf32>
    %cst = arith.constant dense<0.000000e+00> : vector<3x256xf32>
    %3 = tpu.matmul %0, %2, %cst {dimension_numbers = #tpu.dot_dimension_numbers<[1], [0], [0], [1], [0, 0, 1, 1], [], []>, precision = #tpu.contract_precision<fp32>} : vector<3x28xf32>, vector<28x256xf32>, vector<3x256xf32> -> vector<3x256xf32>
    %4 = vector.extract_strided_slice %3 {offsets = [0, 0], sizes = [1, 256], strides = [1, 1]} : vector<3x256xf32> to vector<1x256xf32>
    %c0_4 = arith.constant 0 : index
    %c0_5 = arith.constant 0 : index
    %c0_6 = arith.constant 0 : index
    %5 = vector.load %arg4[%c0_4, %c0_5, %c0_6] : memref<1x1x256xf32, #tpu.memory_space<vmem>>, vector<1x1x256xf32>
    %6 = vector.shape_cast %5 : vector<1x1x256xf32> to vector<1x256xf32>
    %7 = vector.shape_cast %4 : vector<1x256xf32> to vector<1x1x256xf32>
    tpu.vector_store %arg4[%c0_4, %c0_5, %c0_6], %7 {strides = array<i32>} : memref<1x1x256xf32, #tpu.memory_space<vmem>>, vector<1x1x256xf32>,
    %8 = vector.extract_strided_slice %3 {offsets = [1, 0], sizes = [1, 256], strides = [1, 1]} : vector<3x256xf32> to vector<1x256xf32>
    %c0_7 = arith.constant 0 : index
    %c0_8 = arith.constant 0 : index
    %c0_9 = arith.constant 0 : index
    %9 = vector.load %arg5[%c0_7, %c0_8, %c0_9] : memref<1x1x256xf32, #tpu.memory_space<vmem>>, vector<1x1x256xf32>
    %10 = vector.shape_cast %9 : vector<1x1x256xf32> to vector<1x256xf32>
    %11 = vector.shape_cast %8 : vector<1x256xf32> to vector<1x1x256xf32>
    tpu.vector_store %arg5[%c0_7, %c0_8, %c0_9], %11 {strides = array<i32>} : memref<1x1x256xf32, #tpu.memory_space<vmem>>, vector<1x1x256xf32>,
    %12 = vector.extract_strided_slice %3 {offsets = [2, 0], sizes = [1, 256], strides = [1, 1]} : vector<3x256xf32> to vector<1x256xf32>
    %c0_10 = arith.constant 0 : index
    %c0_11 = arith.constant 0 : index
    %c0_12 = arith.constant 0 : index
    %13 = vector.load %arg6[%c0_10, %c0_11, %c0_12] : memref<1x1x256xf32, #tpu.memory_space<vmem>>, vector<1x1x256xf32>
    %14 = vector.shape_cast %13 : vector<1x1x256xf32> to vector<1x256xf32>
    %15 = vector.shape_cast %12 : vector<1x256xf32> to vector<1x1x256xf32>
    tpu.vector_store %arg6[%c0_10, %c0_11, %c0_12], %15 {strides = array<i32>} : memref<1x1x256xf32, #tpu.memory_space<vmem>>, vector<1x1x256xf32>,
    return
  }
  func.func @transform_0(%arg0: i32, %arg1: i32) -> (i32, i32) {
    %c0_i32 = arith.constant 0 : i32
    %c0_i32_0 = arith.constant 0 : i32
    %c0_i32_1 = arith.constant 0 : i32
    return %c0_i32, %c0_i32_0 : i32, i32
  }
  func.func @transform_1(%arg0: i32, %arg1: i32) -> (i32, i32, i32) {
    %c0_i32 = arith.constant 0 : i32
    %c0_i32_0 = arith.constant 0 : i32
    return %arg0, %c0_i32, %arg1 : i32, i32, i32
  }
  func.func @transform_2(%arg0: i32, %arg1: i32) -> (i32, i32, i32) {
    %c0_i32 = arith.constant 0 : i32
    %c0_i32_0 = arith.constant 0 : i32
    return %arg0, %c0_i32, %arg1 : i32, i32, i32
  }
  func.func @transform_3(%arg0: i32, %arg1: i32) -> (i32, i32, i32) {
    %c0_i32 = arith.constant 0 : i32
    %c0_i32_0 = arith.constant 0 : i32
    return %arg0, %c0_i32, %arg1 : i32, i32, i32
  }
  func.func @transform_4(%arg0: i32, %arg1: i32) -> (i32, i32, i32) {
    %c0_i32 = arith.constant 0 : i32
    %c0_i32_0 = arith.constant 0 : i32
    return %arg0, %c0_i32, %arg1 : i32, i32, i32
  }
}

</mosaic_0001>

<bundles_post_ra>
// kernel: tpu_custom_call.1
= control target key start
LH: loop header
LB: loop body
LE: loop exit
PB: predicated region body
PF: predicated region fallthrough
CT: control target
= control target key end

     0   :  { %s1622_s0 = inlined_call_operand.vmem [shape: f32[3,28], index: 0, kind: input, shape index: {}]   ;;  %s1623_s1 = inlined_call_operand.vmem [shape: f32[2,28,256], index: 1, kind: input, shape index: {}]   ;;  %s1624_s2 = inlined_call_operand.hbm [shape: f32[2,1,256], index: 2, kind: output, shape index: {0}]   ;;  %s1625_s3 = inlined_call_operand.hbm [shape: f32[2,1,256], index: 3, kind: output, shape index: {1}]   ;;  %s1626_s4 = inlined_call_operand.hbm [shape: f32[2,1,256], index: 4, kind: output, shape index: {2}]  }
   0x1   :  { %1630 = sst [smem:[#allocation9_spill]] %s1622_s0 }
   0x2   :  { %10 = vsyncpa [#allocation3], 0 }
   0x3   :  { %12 = vsyncpa [#allocation3 + $0x1], 0 }
   0x4   :  { %13 = vsyncpa [#allocation5], 0 }
   0x5   :  { %15 = vsyncpa [#allocation5 + $0x1], 0  ;;  %s1308_s15 = smov 0   ;;  %s1310_s16 = smov 0  }
   0x6   :  { %s1312_s17 = smov 0   ;;  %s1314_s18 = smov 0  }
   0x7   :  { %s1316_s19 = smov 0   ;;  %s1318_s20 = smov 0  }
   0x8 LB: > { %s1052_s21 = sadd.s32 4294967295, %s1276_s20   ;;  %s1627_s22 = sadd.s32 4294967294, %s1276_s20   ;;  %s1276_s20 = sphi %s1318_s20, %s21_s20   ;;  %s1272_s19 = sphi %s1316_s19, %s1643_s19   ;;  %s1268_s18 = sphi %s1314_s18, %s1642_s18   ;;  %s1264_s17 = sphi %s1312_s17, %s1641_s17   ;;  %s1260_s16 = sphi %s1310_s16, %s1640_s16   ;;  %s1256_s15 = sphi %s1308_s15, %s1639_s15  }
   0x9   : > { %s33_s23 = sadd.s32 1, %s1272_s19  ;;  %s91_s24 = sadd.s32 1, %s1264_s17 }
   0xa   : > { %p35_p0 = scmp.ge.s32.totalorder %s33_s23, 2  ;;  %p101_p1 = scmp.ne.s32.totalorder %s1264_s17, %s1260_s16 }
   0xb   : > { %p102_p2 = scmp.eq.s32.totalorder %s1052_s21, 1  ;;  %p107_p3 = scmp.ne.s32.totalorder %s1260_s16, %s1256_s15 }
   0xc   : > { %s1645_s23 = smov (%p35_p0, %s33_s23), 0  ;;  %p108_p5 = scmp.eq.s32.totalorder %s1627_s22, 1 }
   0xd   : > { %p1350_p4 = por %p102_p2, %p101_p1  ;;  %s86_s26 = ssub.s32 %s1272_s19, %s1645_s23 }
   0xe   : > { %p1056_p6 = scmp.ge.s32.totalorder %s1276_s20, 1  ;;  %p89_p7 = scmp.eq.s32.totalorder %s86_s26, 0 }
   0xf   : > { %p1359_p8 = por %p108_p5, %p107_p3  ;;  %p198_p9 = scmp.lt.s32.totalorder %s1276_s20, 3 }
  0x10   : > { %s1365_s28 = scalar_select %p89_p7, %s1264_s17, %s91_s24  }
  0x11   : > { %p199_p10 = pnand %p1056_p6, %p198_p9 }
  0x12   : > { %p239_p11 = scmp.lt.s32.totalorder (!%p199_p10), %s1268_s18, 1  ;;  %s1633_s0 = sld [smem:[#allocation9_spill]] (!%p199_p10) }
  0x13   : > { %202 = sbr.rel (%p199_p10) target bundleno = 327 (0x147), region = 28  ;;  %s221_s10 = sand.u32 (!%p199_p10), 1, %s1260_s16  }
  0x14   : > { %s1482_s11 = sshll.u32 (!%p199_p10), %s221_s10, 1  ;;  %s1486_s12 = sand.u32 (!%p199_p10), 1, %s1052_s21  }
  0x15   : > { %s1074_s13 = sshll.u32 (!%p199_p10), %s1268_s18, 5  ;;  %s223_s14 = scalar_lea.vmem (!%p199_p10), [#allocation2], %s1482_s11 }
  0x16   : > { %s877_s24 = sshll.u32 (!%p199_p10), %s223_s14, 4  ;;  %s1629_s26 = scalar_lea.vmem (!%p199_p10), [#allocation4], %s1482_s11  ;;  %s1505_s24 = int_to_ptr.vmem [resolvable:$true] %s877_s24 }
  0x17   : > { %s893_s29 = sshll.u32 (!%p199_p10), %s1629_s26, 4  ;;  %s1628_s30 = scalar_lea.vmem (!%p199_p10), [#allocation6], %s1482_s11  ;;  %s1512_s29 = int_to_ptr.vmem [resolvable:$true] %s893_s29 }
  0x18   : > { %v251_v0 = vld [vmem:[%s1633_s0] sm:$0x7]  ;;  %vm260_vm0 = vcmask 228352   ;;  %v1278_v1 = vmov 0.0   ;;  %s240_s5 = scalar_select %p239_p11, %s1268_s18, 1  ;;  %vm264_vm1 = vcmask 1043456  }
  0x19   : > { %343 = vmatprep.mubr.f32.mxu0 %v1278_v1  ;;  %v262_v2 = vsel %vm260_vm0, %v251_v0, 0  ;;  %459 = vmatprep.mubr.f32.mxu1 %v1278_v1  ;;  %s1503_s18 = scalar_lea.hbm %s1624_s2, %s1074_s13  ;;  %s1519_s22 = scalar_lea.hbm %s1626_s4, %s1074_s13 }
  0x1a   : > { %v1374_v3 = vand.u32 4294901760, %v262_v2  ;;  %s1073_s6 = sshll.u32 %s240_s5, 6  ;;  %s909_s5 = sshll.u32 %s1628_s30, 4  ;;  %s1521_s5 = int_to_ptr.vmem [resolvable:$true] %s909_s5 }
  0x1b   : > { %s246_s9 = scalar_lea.vmem %s1623_s1, %s1073_s6  ;;  %s851_s7 = scalar_lea.sflag [#allocation3], %s221_s10 }
  0x1c   : > { %v1377_v4 = vsub.f32 %v262_v2, %v1374_v3  ;;  %v259_v5 = vld [vmem:[%s246_s9 + $0x38] sm:$0xf]  ;;  %v258_v6 = vld [vmem:[%s246_s9 + $0x30] sm:$0xf]  ;;  %v257_v7 = vld [vmem:[%s246_s9 + $0x28] sm:$0xff]  ;;  %s1144_s8 = scalar_lea.vmem %s1505_s24, 32 }
  0x1d   : > { %v269_v9 = vsel %vm264_vm1, %v259_v5, 0  ;;  %v266_v10 = vsel %vm264_vm1, %v258_v6, 0  ;;  %v1383_v11 = vand.u32 4294901760, %v257_v7  ;;  %v256_v12 = vld [vmem:[%s246_s9 + $0x20] sm:$0xff]  ;;  %v255_v13 = vld [vmem:[%s246_s9 + $0x18] sm:$0xff]  ;;  %v254_v14 = vld [vmem:[%s246_s9 + $0x10] sm:$0xff]  ;;  %p1145_p12 = scmp.ne.s32.totalorder %s1505_s24, %s1144_s8 }
  0x1e   : > { %v346_v8 = vand.u32 4294901760, %v1377_v4  ;;  %v1385_v15 = vand.u32 4294901760, %v269_v9  ;;  %v1387_v16 = vand.u32 4294901760, %v266_v10  ;;  %v1389_v17 = vand.u32 4294901760, %v256_v12  ;;  %v253_v19 = vld [vmem:[%s246_s9 + $0x8] sm:$0xff]  ;;  %v252_v20 = vld [vmem:[%s246_s9] sm:$0xff]  ;;  %s1510_s9 = scalar_lea.hbm %s1625_s3, %s1074_s13 }
  0x1f   : > { %v1391_v18 = vand.u32 4294901760, %v255_v13  ;;  %v1393_v21 = vand.u32 4294901760, %v254_v14  ;;  %v1395_v22 = vand.u32 4294901760, %v253_v19  ;;  %v1397_v23 = vand.u32 4294901760, %v252_v20  ;;  %p1146_p13 = pnand %p1145_p12, %p1350_p4  ;;  %s1280_s30 = smov [#allocation2]  }
  0x20   : > { %v1400_v24 = vsub.f32 %v257_v7, %v1383_v11  ;;  %296 = vmatprep.subr.mxu0 %v1385_v15  ;;  %v1404_v25 = vsub.f32 %v269_v9, %v1385_v15  ;;  %v1407_v26 = vsub.f32 %v266_v10, %v1387_v16  ;;  %v347_v27 = vsub.f32 %v1377_v4, %v346_v8  ;;  %s1148_s26 = sshll.u32 %s1280_s30, 4  ;;  %s1149_s26 = int_to_ptr.vmem [resolvable:$false] %s1148_s26 }
  0x21   : > { %v1413_v28 = vsub.f32 %v256_v12, %v1389_v17  ;;  %298 = vmatpush1.msra.mxu0 %v1387_v16  ;;  %v1418_v30 = vsub.f32 %v255_v13, %v1391_v18  ;;  %v1421_v31 = vsub.f32 %v254_v14, %v1393_v21  ;;  %v1424_v32 = vsub.f32 %v253_v19, %v1395_v22  ;;  %p1147_p0 = pneg %p1146_p13  ;;  %s1150_s0 = scalar_lea.vmem %s1149_s26, 64 }
  0x22   : > { %v393_v29 = vand.u32 4294901760, %v1400_v24  ;;  %300 = vmatprep.subr.mxu0 %v1383_v11  ;;  %v381_v33 = vand.u32 4294901760, %v1404_v25  ;;  %v387_v34 = vand.u32 4294901760, %v1407_v26  ;;  %v422_v43 = vsub.f32 %v252_v20, %v1397_v23  ;;  %p1151_p1 = scmp.lt.s32.totalorder %s1505_s24, %s1149_s26  ;;  %p1152_p2 = scmp.lt.s32.totalorder %s1150_s0, %s1144_s8 }
  0x23   : > { %v399_v35 = vand.u32 4294901760, %v1413_v28  ;;  %302 = vmatpush1.msra.mxu0 %v1389_v17  ;;  %v405_v37 = vand.u32 4294901760, %v1418_v30  ;;  %v411_v38 = vand.u32 4294901760, %v1421_v31  ;;  %v417_v39 = vand.u32 4294901760, %v1424_v32 }
  0x24   : > { %v394_v36 = vsub.f32 %v1400_v24, %v393_v29  ;;  %304 = vmatprep.subr.mxu0 %v1391_v18  ;;  %v382_v40 = vsub.f32 %v1404_v25, %v381_v33  ;;  %v388_v41 = vsub.f32 %v1407_v26, %v387_v34  ;;  %v348_v45 = vand.u32 4294901760, %v347_v27  ;;  %p1153_p3 = por %p1152_p2, %p1151_p1 }
  0x25   : > { %v400_v42 = vsub.f32 %v1413_v28, %v399_v35  ;;  %306 = vmatpush1.msra.mxu0 %v1393_v21  ;;  %v406_v46 = vsub.f32 %v1418_v30, %v405_v37  ;;  %v412_v47 = vsub.f32 %v1421_v31, %v411_v38  ;;  %v418_v50 = vsub.f32 %v1424_v32, %v417_v39 }
  0x26   : > { %v395_v44 = vand.u32 4294901760, %v394_v36  ;;  %308 = vmatprep.subr.mxu0 %v1395_v22  ;;  %v383_v48 = vand.u32 4294901760, %v382_v40  ;;  %v389_v49 = vand.u32 4294901760, %v388_v41  ;;  %v423_v51 = vand.u32 4294901760, %v422_v43  ;;  %p1154_p5 = pnand %p1153_p3, %p1147_p0 }
  0x27   : > { %310 = vmatpush1.msra.mxu0 %v1397_v23  ;;  %v401_v52 = vand.u32 4294901760, %v400_v42  ;;  %v407_v53 = vand.u32 4294901760, %v406_v46  ;;  %v413_v55 = vand.u32 4294901760, %v412_v47  ;;  %v419_v56 = vand.u32 4294901760, %v418_v50 }
  0x28   : > { %384 = vmatprep.subr.mxu1 %v383_v48  ;;  %493 = vmatprep.subr.mxu0 %v1404_v25  ;;  %v424_v54 = vsub.f32 %v422_v43, %v423_v51  ;;  %v820_v10 = vlaneseq }
  0x29   : > { %390 = vmatpush1.msra.mxu1 %v389_v49  ;;  %349 = vmatmul.mubr.f32.vlgmr.msra.gmra.mxu0 %v348_v45 }
  0x2a   : > { %396 = vmatprep.subr.mxu1 %v395_v44  ;;  %496 = vmatpush1.msra.mxu0 %v1407_v26  ;;  %v425_v57 = vand.u32 4294901760, %v424_v54  ;;  %v821_v14 = vshrl.u32 %v820_v10, 7  ;;  %vm1493_vm2 = vcmp.lt.s32.totalorder %v820_v10, 256 }
  0x2b   : > { %402 = vmatpush1.msra.mxu1 %v401_v52  ;;  %499 = vmatprep.subr.mxu0 %v1400_v24 }
  0x2c   : > { %408 = vmatprep.subr.mxu1 %v407_v53  ;;  %502 = vmatpush1.msra.mxu0 %v1413_v28 }
  0x2d   : > { %414 = vmatpush1.msra.mxu1 %v413_v55  ;;  %505 = vmatprep.subr.mxu0 %v1418_v30 }
  0x2e   : > { %420 = vmatprep.subr.mxu1 %v419_v56  ;;  %508 = vmatpush1.msra.mxu0 %v1421_v31 }
  0x2f   : > { %426 = vmatpush1.msra.mxu1 %v425_v57  ;;  %511 = vmatprep.subr.mxu0 %v1424_v32 }
  0x30   : > { %461 = vmatmul.mubr.f32.vlgmr.msra.gmra.mxu1 %v1374_v3  ;;  %581 = vmatprep.subr.mxu1 %v1385_v15 }
  0x31   : > { %514 = vmatpush1.msra.mxu0 %v422_v43  ;;  %547 = vmatprep.mubr.f32.mxu0 %v1278_v1 }
  0x32   : > { %583 = vmatpush1.msra.mxu1 %v1387_v16  ;;  %550 = vmatmul.mubr.f32.vlgmr.msra.gmra.mxu0 %v1377_v4 }
  0x33   : > { %585 = vmatprep.subr.mxu1 %v1383_v11  ;;  %665 = vmatprep.subr.mxu0 %v381_v33 }
  0x34   : > { %587 = vmatpush1.msra.mxu1 %v1389_v17  ;;  %669 = vmatpush1.msra.mxu0 %v387_v34 }
  0x35   : > { %589 = vmatprep.subr.mxu1 %v1391_v18  ;;  %673 = vmatprep.subr.mxu0 %v393_v29 }
  0x36   : > { %591 = vmatpush1.msra.mxu1 %v1393_v21  ;;  %677 = vmatpush1.msra.mxu0 %v399_v35 }
  0x37   : > { %593 = vmatprep.subr.mxu1 %v1395_v22  ;;  %681 = vmatprep.subr.mxu0 %v405_v37 }
  0x38   : > { %595 = vmatpush1.msra.mxu1 %v1397_v23  ;;  %628 = vmatprep.mubr.f32.mxu1 %v1278_v1 }
  0x39   : > { %685 = vmatpush1.msra.mxu0 %v411_v38  ;;  %632 = vmatmul.mubr.f32.vlgmr.msra.gmra.mxu1 %v346_v8  ;;  %v1279_v8 = vmov 1966171168  }
  0x3a   : > { %689 = vmatprep.subr.mxu0 %v417_v39  ;;  %759 = vmatprep.subr.mxu1 %v1385_v15  ;;  %v818_v9 = vunpack.c.l.s4 %v1279_v8 }
  0x3b   : > { %693 = vmatpush1.msra.mxu0 %v423_v51  ;;  %726 = vmatprep.mubr.f32.mxu0 %v1278_v1 }
  0x3c   : > { %761 = vmatpush1.msra.mxu1 %v1387_v16  ;;  %728 = vmatmul.mubr.f32.vlgmr.msra.gmra.mxu0 %v1374_v3  ;;  %v819_v13 = vunpack.c.0.s8 %v818_v9 }
  0x3d   : > { %763 = vmatprep.subr.mxu1 %v1383_v11  ;;  %806 = vmatprep.mubr.f32.mxu1 %v1278_v1 }
  0x3e   : > { %765 = vmatpush1.msra.mxu1 %v1389_v17 }
  0x3f   : > { %767 = vmatprep.subr.mxu1 %v1391_v18 }
  0x40   : > { %769 = vmatpush1.msra.mxu1 %v1393_v21  ;;  %v822_v21 = vsub.s32 %v819_v13, %v821_v14 }
  0x41   : > { %771 = vmatprep.subr.mxu1 %v1395_v22 }
  0x42   : > { %773 = vmatpush1.msra.mxu1 %v1397_v23 }
  0x43   : > { %808 = vmatmul.mubr.f32.vlgmr.msra.gmra.mxu1 %v1374_v3 }
  0xe9   : > { %v350_v58 = vpop.f32.mrf.mxu0 }
  0xeb   : > { %v352_v59 = vpop.f32.mrf.mxu0 }
  0xf0   : > { %v462_v60 = vpop.f32.mrf.mxu1 }
  0xf1   : > { %v463_v0 = vadd.f32 %v462_v60, %v350_v58 }
  0xf2   : > { %v464_v61 = vpop.f32.mrf.mxu1  ;;  %v551_v62 = vpop.f32.mrf.mxu0 }
  0xf3   : > { %v465_v1 = vadd.f32 %v464_v61, %v352_v59  ;;  %v552_v6 = vadd.f32 %v551_v62, %v463_v0 }
  0xf4   : > { %v553_v2 = vpop.f32.mrf.mxu0 }
  0xf5   : > { %v554_v7 = vadd.f32 %v553_v2, %v465_v1 }
  0xf9   : > { %v633_v63 = vpop.f32.mrf.mxu1 }
  0xfa   : > { %v634_v3 = vadd.f32 %v633_v63, %v552_v6 }
  0xfb   : > { %v635_v4 = vpop.f32.mrf.mxu1 }
  0xfc   : > { %v729_v5 = vpop.f32.mrf.mxu0  ;;  %v636_v11 = vadd.f32 %v635_v4, %v554_v7 }
  0xfd   : > { %v730_v16 = vadd.f32 %v729_v5, %v634_v3 }
  0xfe   : > { %v731_v12 = vpop.f32.mrf.mxu0 }
  0xff   : > { %v732_v17 = vadd.f32 %v731_v12, %v636_v11 }
 0x103   : > { %v809_v15 = vpop.f32.mrf.mxu1 }
 0x104   : > { %v810_v19 = vadd.f32 %v809_v15, %v730_v16 }
 0x105   : > { %v811_v18 = vpop.f32.mrf.mxu1 }
 0x106   : > { %v812_v20 = vadd.f32 %v811_v18, %v732_v17 }
 0x108   : > { %v816_v22 = vcombine.low %v810_v19, %v812_v20 }
 0x10a   : > { %v823_v23 = vrot.slane %v816_v22, %v822_v21 }
 0x10c   : > { %v830_v25 = vrot.slane %v823_v23, %v822_v21  ;;  %v837_v26 = vcombine.high %v823_v23, %v823_v23 }
 0x10e   : > { %v847_v27 = vcombine.high %v830_v25, %v830_v25  ;;  %v844_v28 = vrot.slane %v837_v26, %v822_v21  ;;  %836 = vst.msk [vmem:[%s223_s14] sm:$0x3] %vm1493_vm2, %v830_v25 }
 0x10f   : > { %1157 = shalt.err (!%p1154_p5)
}
 0x110   : > { %s1158_s13 = scalar_lea.hbm %s1503_s18, 32  ;;  %s1162_s30 = scalar_lea.hbm %s1624_s2, 64 }
 0x111   : > { %p1159_p6 = scmp.ne.s32.totalorder %s1503_s18, %s1158_s13  ;;  %p1163_p10 = scmp.lt.s32.totalorder %s1503_s18, %s1624_s2 }
 0x112   : > { %p1164_p11 = scmp.lt.s32.totalorder %s1162_s30, %s1158_s13 }
 0x113   : > { %p1160_p7 = pnand %p1159_p6, %p1350_p4 }
 0x114   : > { %p1165_p12 = por %p1164_p11, %p1163_p10 }
 0x115   : > { %p1161_p9 = pneg %p1160_p7 }
 0x117   : > { %p1166_p13 = pnand %p1165_p12, %p1161_p9 }
 0x119   : > { %1169 = shalt.err (!%p1166_p13)
}
 0x11a   : > { %1077 = dma.vmem_to_hbm [thread:$0]  (%p1350_p4), %s1505_s24, 32, %s1503_s18, %s851_s7  }
 0x11b   : > { %s1636_s0 = scalar_lea.vmem [#allocation4], %s1482_s11  ;;  %s1637_s26 = scalar_lea.vmem [#allocation6], %s1482_s11 }
 0x11c   : > { %846 = vst.msk [vmem:[%s1636_s0] sm:$0x3] %vm1493_vm2, %v844_v28  ;;  %849 = vst.msk [vmem:[%s1637_s26] sm:$0x3] %vm1493_vm2, %v847_v27  ;;  %s856_s8 = scalar_lea.sflag [#allocation5], %s1486_s12  ;;  %s1170_s13 = scalar_lea.vmem %s1512_s29, 32 }
 0x11d   : > { %p1171_p0 = scmp.ne.s32.totalorder %s1512_s29, %s1170_s13  ;;  %s1281_s10 = smov [#allocation4]  }
 0x11e   : > { %s1174_s14 = sshll.u32 %s1281_s10, 4  ;;  %s1175_s14 = int_to_ptr.vmem [resolvable:$false] %s1174_s14 }
 0x11f   : > { %p1172_p1 = pnand %p1171_p0, %p1350_p4  ;;  %s1176_s30 = scalar_lea.vmem %s1175_s14, 64 }
 0x120   : > { %p1177_p3 = scmp.lt.s32.totalorder %s1512_s29, %s1175_s14  ;;  %p1178_p5 = scmp.lt.s32.totalorder %s1176_s30, %s1170_s13 }
 0x121   : > { %p1173_p2 = pneg %p1172_p1 }
 0x122   : > { %p1179_p6 = por %p1178_p5, %p1177_p3 }
 0x124   : > { %p1180_p7 = pnand %p1179_p6, %p1173_p2 }
 0x126   : > { %1183 = shalt.err (!%p1180_p7)
}
 0x127   : > { %s1184_s11 = scalar_lea.hbm %s1510_s9, 32  ;;  %s1188_s7 = scalar_lea.hbm %s1625_s3, 64 }
 0x128   : > { %p1185_p9 = scmp.ne.s32.totalorder %s1510_s9, %s1184_s11  ;;  %p1189_p12 = scmp.lt.s32.totalorder %s1510_s9, %s1625_s3 }
 0x129   : > { %p1190_p13 = scmp.lt.s32.totalorder %s1188_s7, %s1184_s11 }
 0x12a   : > { %p1186_p10 = pnand %p1185_p9, %p1350_p4 }
 0x12b   : > { %p1191_p0 = por %p1190_p13, %p1189_p12 }
 0x12c   : > { %p1187_p11 = pneg %p1186_p10 }
 0x12e   : > { %p1192_p1 = pnand %p1191_p0, %p1187_p11 }
 0x130   : > { %1195 = shalt.err (!%p1192_p1)
}
 0x131   : > { %1078 = dma.vmem_to_hbm [thread:$0]  (%p1350_p4), %s1512_s29, 32, %s1510_s9, %s856_s8  }
 0x132   : > { %s1196_s0 = scalar_lea.vmem %s1521_s5, 32  ;;  %s1282_s26 = smov [#allocation6]  }
 0x133   : > { %p1197_p2 = scmp.ne.s32.totalorder %s1521_s5, %s1196_s0  ;;  %s1200_s13 = sshll.u32 %s1282_s26, 4  ;;  %s1201_s13 = int_to_ptr.vmem [resolvable:$false] %s1200_s13 }
 0x134   : > { %s1202_s10 = scalar_lea.vmem %s1201_s13, 64  ;;  %p1203_p6 = scmp.lt.s32.totalorder %s1521_s5, %s1201_s13 }
 0x135   : > { %p1198_p3 = pnand %p1197_p2, %p1350_p4  ;;  %p1204_p7 = scmp.lt.s32.totalorder %s1202_s10, %s1196_s0 }
 0x137   : > { %p1199_p5 = pneg %p1198_p3  ;;  %p1205_p9 = por %p1204_p7, %p1203_p6 }
 0x139   : > { %p1206_p10 = pnand %p1205_p9, %p1199_p5 }
 0x13b   : > { %1209 = shalt.err (!%p1206_p10)
}
 0x13c   : > { %s1210_s14 = scalar_lea.hbm %s1519_s22, 32  ;;  %s1214_s30 = scalar_lea.hbm %s1626_s4, 64 }
 0x13d   : > { %p1211_p11 = scmp.ne.s32.totalorder %s1519_s22, %s1210_s14  ;;  %p1215_p0 = scmp.lt.s32.totalorder %s1519_s22, %s1626_s4 }
 0x13e   : > { %p1216_p1 = scmp.lt.s32.totalorder %s1214_s30, %s1210_s14 }
 0x13f   : > { %p1212_p12 = pnand %p1211_p11, %p1350_p4 }
 0x140   : > { %p1217_p2 = por %p1216_p1, %p1215_p0 }
 0x141   : > { %p1213_p13 = pneg %p1212_p12 }
 0x143   : > { %p1218_p3 = pnand %p1217_p2, %p1213_p13 }
 0x145   : > { %1221 = shalt.err (!%p1218_p3)
}
 0x146   : > { %1079 = dma.vmem_to_hbm [thread:$0]  (%p1350_p4), %s1521_s5, 32, %s1519_s22, %s856_s8  }
 0x147 PF: > { %p1093_p5 = scmp.ge.s32.totalorder %s1276_s20, 2  ;;  %s921_s18 = sand.u32 1, %s1256_s15  }
 0x148   : > { %s922_s7 = scalar_lea.sflag [#allocation3], %s921_s18 }
 0x149   : > { %p1084_p6 = pnand %p1093_p5, %p1359_p8 }
 0x14b   : > { %p1085_p7 = pneg %p1084_p6 }
 0x14d   : > { %1247 = dma.done.wait (%p1085_p7), %s922_s7, 32  }
 0x14e   : > { %1249 = vsyncadd (%p1085_p7), %s922_s7, 4294967264  ;;  %s1638_s21 = sadd.s32 4294967294, %s1276_s20  }
 0x14f   : > { %s930_s25 = sand.u32 1, %s1638_s21  }
 0x150   : > { %s931_s6 = scalar_lea.sflag [#allocation5], %s930_s25 }
 0x151   : > { %1251 = dma.done.wait (%p1085_p7), %s931_s6, 64  }
 0x152   : > { %1253 = vsyncadd (%p1085_p7), %s931_s6, 4294967232  ;;  %s21_s20 = sadd.s32 1, %s1276_s20   ;;  %s1639_s15 = smov %s1260_s16 }
 0x153   : > { %p18_p4 = scmp.ge.s32.totalorder %s21_s20, 4   ;;  %s1640_s16 = smov %s1264_s17 }
 0x154   : > { %s1641_s17 = smov %s1365_s28  ;;  %s1642_s18 = smov %s1272_s19 }
 0x155   : > { %s1643_s19 = smov %s1645_s23  ;;  %20 = sbr.rel (!%p18_p4) target bundleno = 8 (0x8), region = 95 }
 0x15a   :  { %945 = vsyncpa [#allocation3], 1 }
 0x15b   :  { %947 = vsyncpa [#allocation3 + $0x1], 1 }
 0x15c   :  { %948 = vsyncpa [#allocation5], 1 }
 0x15d   :  { %950 = vsyncpa [#allocation5 + $0x1], 1 }

</bundles_post_ra>
